<compile_context>
chip_gen: v7x
topology: tpu7x:2x2x1
jax: 0.10.0
libtpu: 0.0.40
codegen_flags: <defaults>
</compile_context>

<pallas_src>
import jax
import jax.numpy as jnp
from jax.experimental import pallas as pl
from jax.experimental.pallas import tpu as pltpu


def _round_up(a, b):
    return (a + b - 1) // b * b


def _outconv_kernel_vpu(x_ref, w_ref, b_ref, o_ref):
    """VPU broadcast-MAC path for small C_in (a K=4,N=3 matmul would use <1% of the MXU).

    x_ref: (C_in, T)  w_ref: (C_out, C_in)  b_ref: (C_out, 1)  o_ref: (C_out, T)
    """
    c_in = x_ref.shape[0]
    # Load the small weight / bias once per tile (f32 accumulate; upcast covers
    # bf16 inputs on v5e which has no bf16 VPU).
    w = w_ref[...].astype(jnp.float32)          # (C_out, C_in)
    b = b_ref[...].astype(jnp.float32)          # (C_out, 1)
    # Unrolled over the small, static input-channel count:
    #   acc[co, t] += w[co, ci] * x[ci, t]
    acc = w[:, 0:1] * x_ref[0:1, :].astype(jnp.float32)            # (C_out, T)
    for ci in range(1, c_in):
        acc = acc + w[:, ci:ci + 1] * x_ref[ci:ci + 1, :].astype(jnp.float32)
    o_ref[...] = (acc + b).astype(o_ref.dtype)


def _outconv_kernel_mxu(x_ref, w_ref, b_ref, o_ref):
    """MXU path for larger channel counts."""
    acc = jnp.dot(w_ref[...], x_ref[...], preferred_element_type=jnp.float32)
    o_ref[...] = (acc + b_ref[...].astype(jnp.float32)).astype(o_ref.dtype)


def outconv_pallas(x_nchw, weight, bias, *, max_tile_hw=2048):
    """1x1 Conv2d forward (PyTorch OutConv).

    x_nchw : (N, C_in, H, W)
    weight : (C_out, C_in, 1, 1)   (PyTorch Conv2d layout)
    bias   : (C_out,)
    returns: (N, C_out, H, W)
    """
    N, C_in, H, W = x_nchw.shape
    C_out = weight.shape[0]
    HW = H * W

    # Native NCHW layout: these reshapes are free (no data movement).
    x3 = x_nchw.reshape(N, C_in, HW)            # (N, C_in, HW)
    w2 = weight.reshape(C_out, C_in)            # (C_out, C_in)
    b2 = bias.reshape(C_out, 1)                 # (C_out, 1)

    # Spatial (lane) tile: multiple of 128, capped at max_tile_hw.
    tile = min(max_tile_hw, _round_up(HW, 128))
    tile = _round_up(tile, 128)
    HW_pad = _round_up(HW, tile)
    if HW_pad != HW:
        # Ragged tail only: pad the contiguous last axis; padded columns hold
        # bias-only garbage and are sliced off after the call.
        x3 = jnp.pad(x3, ((0, 0), (0, 0), (0, HW_pad - HW)))

    kernel = _outconv_kernel_vpu if C_in < 64 else _outconv_kernel_mxu

    grid = (N, HW_pad // tile)
    out3 = pl.pallas_call(
        kernel,
        out_shape=jax.ShapeDtypeStruct((N, C_out, HW_pad), x_nchw.dtype),
        grid_spec=pltpu.PrefetchScalarGridSpec(
            num_scalar_prefetch=0,
            grid=grid,
            in_specs=[
                # x tile: one batch element, all input channels, `tile` lanes.
                pl.BlockSpec((pl.Squeezed(), C_in, tile), lambda n, j: (n, 0, j)),
                # Full weight / bias stay resident (constant index_map).
                pl.BlockSpec((C_out, C_in), lambda n, j: (0, 0)),
                pl.BlockSpec((C_out, 1), lambda n, j: (0, 0)),
            ],
            out_specs=pl.BlockSpec((pl.Squeezed(), C_out, tile),
                                   lambda n, j: (n, 0, j)),
        ),
        compiler_params=pltpu.CompilerParams(
            dimension_semantics=("parallel", "parallel"),
        ),
    )(x3, w2, b2)

    if HW_pad != HW:
        out3 = out3[:, :, :HW]
    return out3.reshape(N, C_out, H, W)


if __name__ == "__main__":
    key = jax.random.PRNGKey(0)
    k_x, k_w, k_b = jax.random.split(key, 3)

    N, C_in, H, W = 2, 4, 16, 16
    C_out = 3

    x = jax.random.normal(k_x, (N, C_in, H, W), dtype=jnp.float32)

    # PyTorch Conv2d default init: uniform(-bound, bound), bound = 1/sqrt(fan_in).
    bound = 1.0 / (C_in ** 0.5)
    weight = jax.random.uniform(k_w, (C_out, C_in, 1, 1),
                                minval=-bound, maxval=bound, dtype=jnp.float32)
    bias = jax.random.uniform(k_b, (C_out,),
                              minval=-bound, maxval=bound, dtype=jnp.float32)

    out = outconv_pallas(x, weight, bias)
    jax.block_until_ready(out)

    # Reference: plain-JAX 1x1 conv (einsum) + bias.
    ref = jnp.einsum("nchw,oc->nohw", x, weight.reshape(C_out, C_in)) \
          + bias.reshape(1, C_out, 1, 1)
    assert out.shape == (N, C_out, H, W)
    assert jnp.allclose(out, ref, atol=1e-5, rtol=1e-5)

    print("KERNEL_OK")
</pallas_src>

<mosaic_0001>
module attributes {stable_mosaic.version = 11 : i64} {
  func.func @_outconv_kernel_vpu(%arg0: i32, %arg1: i32, %arg2: memref<1x4x256xf32, #tpu.memory_space<vmem>>, %arg3: memref<3x4xf32, #tpu.memory_space<vmem>>, %arg4: memref<3x1xf32, #tpu.memory_space<vmem>>, %arg5: memref<1x3x256xf32, #tpu.memory_space<vmem>>) attributes {dimension_semantics = [#tpu.dimension_semantics<parallel>, #tpu.dimension_semantics<parallel>], iteration_bounds = array<i64: 2, 1>, scalar_prefetch = 0 : i64, scratch_operands = 0 : i64, tpu.core_type = #tpu.core_type<tc>, window_params = [{transform_indices = @transform_0, window_bounds = array<i64: 1, 4, 256>}, {pipeline_mode = #tpu.pipeline_mode<synchronous>, transform_indices = @transform_1, window_bounds = array<i64: 3, 4>}, {pipeline_mode = #tpu.pipeline_mode<synchronous>, transform_indices = @transform_2, window_bounds = array<i64: 3, 1>}, {transform_indices = @transform_3, window_bounds = array<i64: 1, 3, 256>}]} {
    %c0 = arith.constant 0 : index
    %c0_0 = arith.constant 0 : index
    %0 = vector.load %arg3[%c0, %c0_0] : memref<3x4xf32, #tpu.memory_space<vmem>>, vector<3x4xf32>
    %c0_1 = arith.constant 0 : index
    %c0_2 = arith.constant 0 : index
    %1 = vector.load %arg4[%c0_1, %c0_2] : memref<3x1xf32, #tpu.memory_space<vmem>>, vector<3x1xf32>
    %2 = vector.extract_strided_slice %0 {offsets = [0, 0], sizes = [3, 1], strides = [1, 1]} : vector<3x4xf32> to vector<3x1xf32>
    %c0_3 = arith.constant 0 : index
    %c0_4 = arith.constant 0 : index
    %c0_5 = arith.constant 0 : index
    %3 = vector.load %arg2[%c0_3, %c0_4, %c0_5] : memref<1x4x256xf32, #tpu.memory_space<vmem>>, vector<1x1x256xf32>
    %4 = vector.shape_cast %3 : vector<1x1x256xf32> to vector<1x256xf32>
    %5 = vector.broadcast %2 : vector<3x1xf32> to vector<3x256xf32>
    %6 = vector.broadcast %4 : vector<1x256xf32> to vector<3x256xf32>
    %7 = arith.mulf %5, %6 : vector<3x256xf32>
    %8 = vector.extract_strided_slice %0 {offsets = [0, 1], sizes = [3, 1], strides = [1, 1]} : vector<3x4xf32> to vector<3x1xf32>
    %c0_6 = arith.constant 0 : index
    %c1 = arith.constant 1 : index
    %c0_7 = arith.constant 0 : index
    %9 = vector.load %arg2[%c0_6, %c1, %c0_7] : memref<1x4x256xf32, #tpu.memory_space<vmem>>, vector<1x1x256xf32>
    %10 = vector.shape_cast %9 : vector<1x1x256xf32> to vector<1x256xf32>
    %11 = vector.broadcast %8 : vector<3x1xf32> to vector<3x256xf32>
    %12 = vector.broadcast %10 : vector<1x256xf32> to vector<3x256xf32>
    %13 = arith.mulf %11, %12 : vector<3x256xf32>
    %14 = arith.addf %7, %13 : vector<3x256xf32>
    %15 = vector.extract_strided_slice %0 {offsets = [0, 2], sizes = [3, 1], strides = [1, 1]} : vector<3x4xf32> to vector<3x1xf32>
    %c0_8 = arith.constant 0 : index
    %c2 = arith.constant 2 : index
    %c0_9 = arith.constant 0 : index
    %16 = vector.load %arg2[%c0_8, %c2, %c0_9] : memref<1x4x256xf32, #tpu.memory_space<vmem>>, vector<1x1x256xf32>
    %17 = vector.shape_cast %16 : vector<1x1x256xf32> to vector<1x256xf32>
    %18 = vector.broadcast %15 : vector<3x1xf32> to vector<3x256xf32>
    %19 = vector.broadcast %17 : vector<1x256xf32> to vector<3x256xf32>
    %20 = arith.mulf %18, %19 : vector<3x256xf32>
    %21 = arith.addf %14, %20 : vector<3x256xf32>
    %22 = vector.extract_strided_slice %0 {offsets = [0, 3], sizes = [3, 1], strides = [1, 1]} : vector<3x4xf32> to vector<3x1xf32>
    %c0_10 = arith.constant 0 : index
    %c3 = arith.constant 3 : index
    %c0_11 = arith.constant 0 : index
    %23 = vector.load %arg2[%c0_10, %c3, %c0_11] : memref<1x4x256xf32, #tpu.memory_space<vmem>>, vector<1x1x256xf32>
    %24 = vector.shape_cast %23 : vector<1x1x256xf32> to vector<1x256xf32>
    %25 = vector.broadcast %22 : vector<3x1xf32> to vector<3x256xf32>
    %26 = vector.broadcast %24 : vector<1x256xf32> to vector<3x256xf32>
    %27 = arith.mulf %25, %26 : vector<3x256xf32>
    %28 = arith.addf %21, %27 : vector<3x256xf32>
    %29 = vector.broadcast %1 : vector<3x1xf32> to vector<3x256xf32>
    %30 = arith.addf %28, %29 : vector<3x256xf32>
    %c0_12 = arith.constant 0 : index
    %c0_13 = arith.constant 0 : index
    %c0_14 = arith.constant 0 : index
    %31 = vector.load %arg5[%c0_12, %c0_13, %c0_14] : memref<1x3x256xf32, #tpu.memory_space<vmem>>, vector<1x3x256xf32>
    %32 = vector.shape_cast %31 : vector<1x3x256xf32> to vector<3x256xf32>
    %33 = vector.shape_cast %30 : vector<3x256xf32> to vector<1x3x256xf32>
    tpu.vector_store %arg5[%c0_12, %c0_13, %c0_14], %33 {strides = array<i32>} : memref<1x3x256xf32, #tpu.memory_space<vmem>>, vector<1x3x256xf32>,
    return
  }
  func.func @transform_0(%arg0: i32, %arg1: i32) -> (i32, i32, i32) {
    %c0_i32 = arith.constant 0 : i32
    %c0_i32_0 = arith.constant 0 : i32
    return %arg0, %c0_i32, %arg1 : i32, i32, i32
  }
  func.func @transform_1(%arg0: i32, %arg1: i32) -> (i32, i32) {
    %c0_i32 = arith.constant 0 : i32
    %c0_i32_0 = arith.constant 0 : i32
    %c0_i32_1 = arith.constant 0 : i32
    return %c0_i32, %c0_i32_0 : i32, i32
  }
  func.func @transform_2(%arg0: i32, %arg1: i32) -> (i32, i32) {
    %c0_i32 = arith.constant 0 : i32
    %c0_i32_0 = arith.constant 0 : i32
    %c0_i32_1 = arith.constant 0 : i32
    return %c0_i32, %c0_i32_0 : i32, i32
  }
  func.func @transform_3(%arg0: i32, %arg1: i32) -> (i32, i32, i32) {
    %c0_i32 = arith.constant 0 : i32
    %c0_i32_0 = arith.constant 0 : i32
    return %arg0, %c0_i32, %arg1 : i32, i32, i32
  }
}

</mosaic_0001>

<bundles_post_ra>
// kernel: tpu_custom_call.1
= control target key start
LH: loop header
LB: loop body
LE: loop exit
PB: predicated region body
PF: predicated region fallthrough
CT: control target
= control target key end

     0   :  { %8 = vsyncpa [#allocation3], 0  ;;  %s729_s0 = inlined_call_operand.hbm [shape: f32[2,4,256], index: 0, kind: input, shape index: {}]   ;;  %s730_s1 = inlined_call_operand.vmem [shape: f32[3,4], index: 1, kind: input, shape index: {}]   ;;  %s731_s2 = inlined_call_operand.vmem [shape: f32[3,1], index: 2, kind: input, shape index: {}]   ;;  %s732_s3 = inlined_call_operand.vmem [shape: f32[2,3,256], index: 3, kind: output, shape index: {}]  }
   0x1   :  { %10 = vsyncpa [#allocation3 + $0x1], 0  ;;  %s598_s12 = smov 0   ;;  %s600_s13 = smov 0  }
   0x2   :  { %s602_s14 = smov 0   ;;  %s604_s15 = smov 0  }
   0x3   :  { %s606_s16 = smov 0   ;;  %s608_s17 = smov 0  }
   0x4 LB: > { %s408_s18 = sadd.s32 4294967295, %s571_s17   ;;  %s28_s19 = sadd.s32 1, %s567_s16  ;;  %s571_s17 = sphi %s608_s17, %s16_s17   ;;  %s567_s16 = sphi %s606_s16, %s742_s16   ;;  %s563_s15 = sphi %s604_s15, %s741_s15   ;;  %s559_s14 = sphi %s602_s14, %s740_s14   ;;  %s555_s13 = sphi %s600_s13, %s739_s13   ;;  %s551_s12 = sphi %s598_s12, %s738_s12  }
   0x5   : > { %p30_p0 = scmp.ge.s32.totalorder %s28_s19, 2  ;;  %s37_s20 = sadd.s32 1, %s559_s14 }
   0x6   : > { %p44_p1 = scmp.ne.s32.totalorder %s559_s14, %s555_s13  ;;  %p45_p2 = scmp.eq.s32.totalorder %s571_s17, 0 }
   0x7   : > { %s744_s19 = smov (%p30_p0, %s28_s19), 0  ;;  %p50_p4 = scmp.ne.s32.totalorder %s555_s13, %s551_s12 }
   0x8   : > { %p634_p3 = por %p45_p2, %p44_p1  ;;  %s32_s22 = ssub.s32 %s567_s16, %s744_s19 }
   0x9   : > { %p51_p5 = scmp.eq.s32.totalorder %s408_s18, 0  ;;  %p35_p6 = scmp.eq.s32.totalorder %s32_s22, 0 }
   0xa   : > { %p432_p8 = scmp.lt.s32.totalorder %s571_s17, 2  ;;  %s150_s25 = sand.u32 1, %s559_s14  }
   0xb   : > { %p641_p7 = por %p51_p5, %p50_p4  ;;  %s424_s26 = sshll.u32 %s567_s16, 7 }
   0xc   : > { %s647_s24 = scalar_select %p35_p6, %s559_s14, %s37_s20  }
   0xd   : > { %s412_s27 = sshll.u32 %s150_s25, 3  ;;  %s654_s30 = scalar_lea.hbm %s729_s0, %s424_s26 }
   0xe   : > { %s154_s4 = scalar_lea.vmem [#allocation2], %s412_s27  ;;  %p658_p9 = pnand %p432_p8, %p634_p3 }
   0xf   : > { %s164_s5 = sshll.u32 %s154_s4, 4  ;;  %s151_s7 = scalar_lea.sflag [#allocation3], %s150_s25  ;;  %s662_s5 = int_to_ptr.vmem [resolvable:$true] %s164_s5 }
  0x10   : > { %s491_s8 = scalar_lea.hbm %s654_s30, 128  ;;  %p493_p13 = pneg %p658_p9 }
  0x11   : > { %p492_p12 = scmp.ne.s32.totalorder %s654_s30, %s491_s8  ;;  %s496_s11 = scalar_lea.hbm %s729_s0, 256 }
  0x12   : > { %p497_p2 = scmp.lt.u32.totalorder %s654_s30, %s729_s0  ;;  %p498_p3 = scmp.lt.u32.totalorder %s496_s11, %s491_s8 }
  0x13   : > { %p494_p0 = pnand %p493_p13, %p492_p12  ;;  %p500_p5 = scmp.lt.u32.totalorder %s491_s8, %s654_s30 }
  0x14   : > { %p499_p4 = por %p498_p3, %p497_p2 }
  0x15   : > { %p495_p1 = pneg %p494_p0 }
  0x16   : > { %p501_p6 = por %p500_p5, %p499_p4 }
  0x18   : > { %p502_p8 = pnand %p501_p6, %p495_p1 }
  0x1a   : > { %505 = shalt.err (!%p502_p8)
}
  0x1b   : > { %s506_s20 = scalar_lea.vmem %s662_s5, 128  ;;  %s573_s21 = smov [#allocation2]  }
  0x1c   : > { %p507_p12 = scmp.ne.s32.totalorder %s662_s5, %s506_s20  ;;  %s511_s22 = sshll.u32 %s573_s21, 4  ;;  %s512_s22 = int_to_ptr.vmem [resolvable:$false] %s511_s22 }
  0x1d   : > { %s513_s25 = scalar_lea.vmem %s512_s22, 256  ;;  %p514_p11 = scmp.lt.s32.totalorder %s662_s5, %s512_s22 }
  0x1e   : > { %p509_p0 = pnand %p507_p12, %p493_p13  ;;  %p515_p2 = scmp.lt.s32.totalorder %s513_s25, %s506_s20 }
  0x20   : > { %p510_p10 = pneg %p509_p0  ;;  %p516_p3 = por %p515_p2, %p514_p11 }
  0x22   : > { %p517_p4 = pnand %p516_p3, %p510_p10 }
  0x24   : > { %520 = shalt.err (!%p517_p4)
}
  0x25   : > { %431 = dma.hbm_to_vmem [thread:$0]  (!%p658_p9), %s654_s30, 128, %s662_s5, %s151_s7  }
  0x26   : > { %p736_p1 = scmp.lt.s32.totalorder %s571_s17, 3  ;;  %p737_p5 = scmp.ge.s32.totalorder %s571_s17, 1 }
  0x28   : > { %p170_p13 = pnand %p737_p5, %p736_p1 }
  0x29   : > { %s175_s26 = sand.u32 (!%p170_p13), 1, %s555_s13  }
  0x2a   : > { %173 = sbr.rel (%p170_p13) target bundleno = 198 (0xc6), region = 32  ;;  %s416_s27 = sshll.u32 (!%p170_p13), %s175_s26, 3 }
  0x2b   : > { %s176_s28 = scalar_lea.sflag (!%p170_p13), [#allocation3], %s175_s26  ;;  %s179_s29 = scalar_lea.vmem (!%p170_p13), [#allocation2], %s416_s27 }
  0x31   : > { %546 = dma.done.wait (%p641_p7), %s176_s28, 128  }
  0x32   : > { %548 = vsyncadd (%p641_p7), %s176_s28, 4294967168  ;;  %v574_v0 = vmov 0   ;;  %v575_v1 = vmov 2   ;;  %v217_v2 = vld [vmem:[%s730_s1] sm:$0x7]  ;;  %v576_v3 = vmov 1   ;;  %v226_v6 = vlaneseq }
  0x33   : > { %485 = vset.pattern.permute.xlu0 %v574_v0  ;;  %487 = vset.pattern.permute.xlu1 %v575_v1  ;;  %v577_v4 = vmov 3   ;;  %v218_v5 = vld [vmem:[%s731_s2] sm:$0x7]  ;;  %v421_v15 = vld [vmem:[%s179_s29 + $0x3] ss:$4 sm:$0x3] }
  0x34   : > { %222 = vperm.xlu0 %485, %v217_v2   ;;  %262 = vperm.xlu1 %487, %v217_v2   ;;  %v227_v7 = vshrl.u32 %v226_v6, 7  ;;  %v219_v10 = vld [vmem:[%s179_s29] ss:$4 sm:$0x3]  ;;  %p208_p7 = scmp.lt.s32.totalorder %s563_s15, 1 }
  0x35   : > { %v419_v11 = vld [vmem:[%s179_s29 + $0x1] ss:$4 sm:$0x3]  ;;  %v420_v13 = vld [vmem:[%s179_s29 + $0x2] ss:$4 sm:$0x3] }
  0x36   : > { %v228_v8 = vsub.s32 0, %v227_v7  ;;  %v232_v9 = vsub.s32 1, %v227_v7  ;;  %s746_s15 = smov (!%p208_p7, %s563_s15), 1 }
  0x37   : > { %s425_s23 = sshll.u32 %s746_s15, 3 }
  0x38   : > { %486 = vset.pattern.permute.xlu0 %v576_v3  ;;  %488 = vset.pattern.permute.xlu1 %v577_v4  ;;  %v229_v16 = vrot.slane %v219_v10, %v228_v8  ;;  %v233_v17 = vrot.slane %v219_v10, %v232_v9  ;;  %v248_v18 = vrot.slane %v419_v11, %v228_v8  ;;  %s215_s9 = scalar_lea.vmem %s732_s3, %s425_s23 }
  0x39   : > { %241 = vperm.xlu0 %486, %v217_v2   ;;  %283 = vperm.xlu1 %488, %v217_v2   ;;  %v252_v19 = vrot.slane %v419_v11, %v232_v9  ;;  %v269_v20 = vrot.slane %v420_v13, %v228_v8  ;;  %v273_v21 = vrot.slane %v420_v13, %v232_v9 }
  0x3a   : > { %v290_v22 = vrot.slane %v421_v15, %v228_v8  ;;  %v294_v23 = vrot.slane %v421_v15, %v232_v9 }
  0x3d   : > { %489 = vset.pattern.permute.xlu1 %v574_v0  ;;  %490 = vset.pattern.permute.xlu0 %v574_v0 }
  0x3e   : > { %303 = vperm.xlu1 %489, %v218_v5  }
  0xb3   : > { %v223_v12 = vpop.permute.xlu0 %222  ;;  %v263_v14 = vpop.permute.xlu1 %262 }
  0xb4   : > { %v236_v26 = vmul.f32 %v229_v16, %v223_v12  ;;  %v237_v27 = vmul.f32 %v233_v17, %v223_v12  ;;  %v276_v30 = vmul.f32 %v269_v20, %v263_v14  ;;  %v277_v31 = vmul.f32 %v273_v21, %v263_v14 }
  0xb8   : > { %v242_v24 = vpop.permute.xlu0 %241  ;;  %v284_v25 = vpop.permute.xlu1 %283 }
  0xb9   : > { %v255_v28 = vmul.f32 %v248_v18, %v242_v24  ;;  %v256_v29 = vmul.f32 %v252_v19, %v242_v24  ;;  %v297_v34 = vmul.f32 %v290_v22, %v284_v25  ;;  %v298_v35 = vmul.f32 %v294_v23, %v284_v25 }
  0xbb   : > { %v257_v32 = vadd.f32 %v255_v28, %v236_v26  ;;  %v258_v33 = vadd.f32 %v256_v29, %v237_v27 }
  0xbd   : > { %v278_v36 = vadd.f32 %v276_v30, %v257_v32  ;;  %v279_v37 = vadd.f32 %v277_v31, %v258_v33  ;;  %v304_v38 = vpop.permute.xlu1 %303 }
  0xbf   : > { %v299_v39 = vadd.f32 %v297_v34, %v278_v36  ;;  %v300_v40 = vadd.f32 %v298_v35, %v279_v37 }
  0xc1   : > { %v306_v41 = vadd.f32 %v304_v38, %v299_v39  ;;  %v307_v42 = vadd.f32 %v304_v38, %v300_v40 }
  0xc3   : > { %v310_v43 = vcombine.low %v306_v41, %v307_v42 }
  0xc5   : > { %312 = vst [vmem:[%s215_s9] sm:$0x77] %v310_v43 }
  0xc6 PF: > { %s16_s17 = sadd.s32 1, %s571_s17   ;;  %s738_s12 = smov %s555_s13 }
  0xc7   : > { %p13_p9 = scmp.ge.s32.totalorder %s16_s17, 4   ;;  %s739_s13 = smov %s559_s14 }
  0xc8   : > { %s740_s14 = smov %s647_s24  ;;  %s741_s15 = smov %s567_s16 }
  0xc9   : > { %s742_s16 = smov %s744_s19  ;;  %15 = sbr.rel (!%p13_p9) target bundleno = 4 (0x4), region = 75 }
  0xd0   :  { %343 = vsyncpa [#allocation3], 1 }
  0xd1   :  { %345 = vsyncpa [#allocation3 + $0x1], 1 }

</bundles_post_ra>
